<compile_context>
chip_gen: v7x
topology: tpu7x:2x2x1
jax: 0.10.0
libtpu: 0.0.40
codegen_flags: <defaults>
</compile_context>

<pallas_src>
import jax
import jax.numpy as jnp
from jax import lax
from jax.experimental import pallas as pl
from jax.experimental.pallas import tpu as pltpu


def _arl_kernel(doc_ref, wc_ref, bias_ref, ws_ref, attn_ref, rep_ref):
    # doc_ref : (1, L + 2*pad, WD)  padded document for this batch element
    # wc_ref  : (K, A, WD)          conv weight, tap-major
    # bias_ref: (A, 1)              conv bias
    # ws_ref  : (L, L)              shared projection weight (Linear, no bias)
    # attn_ref: (1, A, L)           aspects_attention output
    # rep_ref : (1, 1, L)           representation output
    L = attn_ref.shape[-1]
    K = wc_ref.shape[0]
    A = wc_ref.shape[1]

    doc = doc_ref[0]                                        # (L + 2*pad, WD)

    # Conv2d(1, A, kernel=(K, WD)):  aspects[a, t] = b[a] + sum_k W_k[a,:] . doc[t+k,:]
    # One transpose-free dot_general per tap, contracting word_dim.
    acc = jnp.zeros((A, L), jnp.float32)
    for k in range(K):                                      # K == 3, static unroll
        acc = acc + lax.dot_general(
            wc_ref[k], doc[k:k + L, :],
            dimension_numbers=(((1,), (1,)), ((), ())),     # contract word_dim
            preferred_element_type=jnp.float32)
    aspects = acc + bias_ref[...]                           # (A, L), bias bcast over L

    # Shared projection over doc_len: lin[a, t] = sum_l aspects[a, l] * Ws[t, l]
    lin = lax.dot_general(
        aspects, ws_ref[...],
        dimension_numbers=(((1,), (1,)), ((), ())),         # contract doc_len
        preferred_element_type=jnp.float32)                 # (A, L)

    # Softmax over the aspect axis (axis 0, size A) -- cross-sublane reduce (XLU)
    m = jnp.max(lin, axis=0, keepdims=True)
    e = jnp.exp(lin - m)
    inv = pl.reciprocal(jnp.sum(e, axis=0, keepdims=True))  # exact: rows sum to 1
    attn = e * inv                                          # (A, L)

    attn_ref[0] = attn
    rep_ref[0] = jnp.sum(attn * aspects, axis=0, keepdims=True)   # (1, L)


def aspect_representation_learning(doc, w_conv, b_conv, w_shared):
    """doc: (B, L, WD); w_conv: (A, 1, K, WD); b_conv: (A,); w_shared: (L, L)."""
    B, L, WD = doc.shape
    A, _, K, _ = w_conv.shape
    pad = (K - 1) // 2

    doc_p = jnp.pad(doc, ((0, 0), (pad, pad), (0, 0)))            # (B, L+2p, WD)
    wc = jnp.transpose(w_conv[:, 0, :, :], (1, 0, 2))             # (K, A, WD)
    bc = b_conv.reshape(A, 1).astype(jnp.float32)                 # (A, 1)

    attn, rep = pl.pallas_call(
        _arl_kernel,
        out_shape=(
            jax.ShapeDtypeStruct((B, A, L), jnp.float32),
            jax.ShapeDtypeStruct((B, 1, L), jnp.float32),
        ),
        grid=(B,),
        in_specs=[
            pl.BlockSpec((1, L + 2 * pad, WD), lambda b: (b, 0, 0)),  # per-step doc
            pl.BlockSpec((K, A, WD), lambda b: (0, 0, 0)),            # resident weight
            pl.BlockSpec((A, 1), lambda b: (0, 0)),                   # resident bias
            pl.BlockSpec((L, L), lambda b: (0, 0)),                   # resident weight
        ],
        out_specs=(
            pl.BlockSpec((1, A, L), lambda b: (b, 0, 0)),
            pl.BlockSpec((1, 1, L), lambda b: (b, 0, 0)),
        ),
        compiler_params=pltpu.CompilerParams(
            dimension_semantics=("parallel",)),   # v7x: shard batch over both TCs
    )(doc_p, wc, bc, w_shared)
    return attn, rep[:, 0, :]


def _reference(doc, w_conv, b_conv, w_shared):
    B, L, WD = doc.shape
    A, _, K, _ = w_conv.shape
    pad = (K - 1) // 2
    doc_p = jnp.pad(doc, ((0, 0), (pad, pad), (0, 0)))
    asp = b_conv[None, :, None] + sum(
        jnp.einsum('bld,ad->bal', doc_p[:, k:k + L, :], w_conv[:, 0, k, :])
        for k in range(K))                                  # (B, A, L)
    lin = jnp.einsum('bal,tl->bat', asp, w_shared)          # (B, A, L)
    attn = jax.nn.softmax(lin, axis=1)
    rep = jnp.sum(attn * asp, axis=1)                       # (B, L)
    return attn, rep


if __name__ == "__main__":
    # B = batch, L = opt.doc_len (multiple of 128 -> lane-dense stores),
    # WD = opt.word_dim, A = 5 aspects (fixed by the module), K = 3 conv taps.
    B, L, WD, A, K = 4, 128, 32, 5, 3

    key = jax.random.PRNGKey(0)
    k1, k2, k3 = jax.random.split(key, 3)

    doc = jax.random.normal(k1, (B, L, WD), dtype=jnp.float32)

    # Deterministic "reset_para"-style init: xavier-normal conv weight, bias 0.1,
    # shared projection ~ U(-0.1, 0.1), no bias (module declares bias=False).
    fan = 1 * K * WD + A * K * WD
    w_conv = (jnp.sqrt(2.0 / fan)
              * jax.random.normal(k2, (A, 1, K, WD), dtype=jnp.float32))
    b_conv = jnp.full((A,), 0.1, dtype=jnp.float32)
    w_shared = jax.random.uniform(k3, (L, L), minval=-0.1, maxval=0.1,
                                  dtype=jnp.float32)

    attn, rep = aspect_representation_learning(doc, w_conv, b_conv, w_shared)
    jax.block_until_ready((attn, rep))

    attn_ref, rep_ref = _reference(doc, w_conv, b_conv, w_shared)
    assert attn.shape == (B, A, L) and rep.shape == (B, L)
    # Comparison vs the plain-XLA reference: allow for MXU/XLA matmul precision
    # differences (both paths are f32, but accumulation order differs).
    assert jnp.allclose(attn, attn_ref, atol=2e-3, rtol=2e-3)
    assert jnp.allclose(rep, rep_ref, atol=2e-3, rtol=2e-3)
    # Softmax is internally exact now (exact reciprocal) -> rows sum to 1 tightly.
    assert jnp.allclose(jnp.sum(attn, axis=1), 1.0, atol=1e-5)

    print("KERNEL_OK")
</pallas_src>

<mosaic_0001>
module attributes {stable_mosaic.version = 11 : i64} {
  func.func @_arl_kernel(%arg0: i32, %arg1: memref<1x130x32xf32, #tpu.memory_space<vmem>>, %arg2: memref<3x5x32xf32, #tpu.memory_space<vmem>>, %arg3: memref<5x1xf32, #tpu.memory_space<vmem>>, %arg4: memref<128x128xf32, #tpu.memory_space<vmem>>, %arg5: memref<1x5x128xf32, #tpu.memory_space<vmem>>, %arg6: memref<1x1x128xf32, #tpu.memory_space<vmem>>) attributes {dimension_semantics = [#tpu.dimension_semantics<parallel>], iteration_bounds = array<i64: 4>, scalar_prefetch = 0 : i64, scratch_operands = 0 : i64, tpu.core_type = #tpu.core_type<tc>, window_params = [{transform_indices = @transform_0, window_bounds = array<i64: 1, 130, 32>}, {pipeline_mode = #tpu.pipeline_mode<synchronous>, transform_indices = @transform_1, window_bounds = array<i64: 3, 5, 32>}, {pipeline_mode = #tpu.pipeline_mode<synchronous>, transform_indices = @transform_2, window_bounds = array<i64: 5, 1>}, {pipeline_mode = #tpu.pipeline_mode<synchronous>, transform_indices = @transform_3, window_bounds = array<i64: 128, 128>}, {transform_indices = @transform_4, window_bounds = array<i64: 1, 5, 128>}, {transform_indices = @transform_5, window_bounds = array<i64: 1, 1, 128>}]} {
    %c0 = arith.constant 0 : index
    %c0_0 = arith.constant 0 : index
    %c0_1 = arith.constant 0 : index
    %0 = vector.load %arg1[%c0, %c0_0, %c0_1] : memref<1x130x32xf32, #tpu.memory_space<vmem>>, vector<1x130x32xf32>
    %1 = vector.shape_cast %0 : vector<1x130x32xf32> to vector<130x32xf32>
    %cst = arith.constant 0.000000e+00 : f32
    %2 = vector.broadcast %cst : f32 to vector<5x128xf32>
    %c0_2 = arith.constant 0 : index
    %c0_3 = arith.constant 0 : index
    %c0_4 = arith.constant 0 : index
    %3 = vector.load %arg2[%c0_2, %c0_3, %c0_4] : memref<3x5x32xf32, #tpu.memory_space<vmem>>, vector<1x5x32xf32>
    %4 = vector.shape_cast %3 : vector<1x5x32xf32> to vector<5x32xf32>
    %5 = vector.extract_strided_slice %1 {offsets = [0, 0], sizes = [128, 32], strides = [1, 1]} : vector<130x32xf32> to vector<128x32xf32>
    %cst_5 = arith.constant dense<0.000000e+00> : vector<5x128xf32>
    %6 = tpu.matmul %4, %5, %cst_5 {dimension_numbers = #tpu.dot_dimension_numbers<[1], [1], [0], [0], [0, 0, 1, 0], [], []>} : vector<5x32xf32>, vector<128x32xf32>, vector<5x128xf32> -> vector<5x128xf32>
    %7 = arith.addf %2, %6 : vector<5x128xf32>
    %c1 = arith.constant 1 : index
    %c0_6 = arith.constant 0 : index
    %c0_7 = arith.constant 0 : index
    %8 = vector.load %arg2[%c1, %c0_6, %c0_7] : memref<3x5x32xf32, #tpu.memory_space<vmem>>, vector<1x5x32xf32>
    %9 = vector.shape_cast %8 : vector<1x5x32xf32> to vector<5x32xf32>
    %10 = vector.extract_strided_slice %1 {offsets = [1, 0], sizes = [128, 32], strides = [1, 1]} : vector<130x32xf32> to vector<128x32xf32>
    %cst_8 = arith.constant dense<0.000000e+00> : vector<5x128xf32>
    %11 = tpu.matmul %9, %10, %cst_8 {dimension_numbers = #tpu.dot_dimension_numbers<[1], [1], [0], [0], [0, 0, 1, 0], [], []>} : vector<5x32xf32>, vector<128x32xf32>, vector<5x128xf32> -> vector<5x128xf32>
    %12 = arith.addf %7, %11 : vector<5x128xf32>
    %c2 = arith.constant 2 : index
    %c0_9 = arith.constant 0 : index
    %c0_10 = arith.constant 0 : index
    %13 = vector.load %arg2[%c2, %c0_9, %c0_10] : memref<3x5x32xf32, #tpu.memory_space<vmem>>, vector<1x5x32xf32>
    %14 = vector.shape_cast %13 : vector<1x5x32xf32> to vector<5x32xf32>
    %15 = vector.extract_strided_slice %1 {offsets = [2, 0], sizes = [128, 32], strides = [1, 1]} : vector<130x32xf32> to vector<128x32xf32>
    %cst_11 = arith.constant dense<0.000000e+00> : vector<5x128xf32>
    %16 = tpu.matmul %14, %15, %cst_11 {dimension_numbers = #tpu.dot_dimension_numbers<[1], [1], [0], [0], [0, 0, 1, 0], [], []>} : vector<5x32xf32>, vector<128x32xf32>, vector<5x128xf32> -> vector<5x128xf32>
    %17 = arith.addf %12, %16 : vector<5x128xf32>
    %c0_12 = arith.constant 0 : index
    %c0_13 = arith.constant 0 : index
    %18 = vector.load %arg3[%c0_12, %c0_13] : memref<5x1xf32, #tpu.memory_space<vmem>>, vector<5x1xf32>
    %19 = vector.broadcast %18 : vector<5x1xf32> to vector<5x128xf32>
    %20 = arith.addf %17, %19 : vector<5x128xf32>
    %c0_14 = arith.constant 0 : index
    %c0_15 = arith.constant 0 : index
    %21 = vector.load %arg4[%c0_14, %c0_15] : memref<128x128xf32, #tpu.memory_space<vmem>>, vector<128x128xf32>
    %cst_16 = arith.constant dense<0.000000e+00> : vector<5x128xf32>
    %22 = tpu.matmul %20, %21, %cst_16 {dimension_numbers = #tpu.dot_dimension_numbers<[1], [1], [0], [0], [0, 0, 1, 0], [], []>} : vector<5x128xf32>, vector<128x128xf32>, vector<5x128xf32> -> vector<5x128xf32>
    %cst_17 = arith.constant dense<0xFF800000> : vector<128xf32>
    %23 = vector.multi_reduction <maximumf>, %22, %cst_17 [0] : vector<5x128xf32> to vector<128xf32>
    %24 = vector.shape_cast %23 : vector<128xf32> to vector<1x128xf32>
    %25 = vector.broadcast %24 : vector<1x128xf32> to vector<5x128xf32>
    %26 = arith.subf %22, %25 : vector<5x128xf32>
    %27 = math.exp %26 : vector<5x128xf32>
    %cst_18 = arith.constant dense<0.000000e+00> : vector<128xf32>
    %28 = vector.multi_reduction <add>, %27, %cst_18 [0] : vector<5x128xf32> to vector<128xf32>
    %29 = vector.shape_cast %28 : vector<128xf32> to vector<1x128xf32>
    %30 = tpu.reciprocal %29 : vector<1x128xf32> -> vector<1x128xf32>
    %31 = vector.broadcast %30 : vector<1x128xf32> to vector<5x128xf32>
    %32 = arith.mulf %27, %31 : vector<5x128xf32>
    %c0_19 = arith.constant 0 : index
    %c0_20 = arith.constant 0 : index
    %c0_21 = arith.constant 0 : index
    %33 = vector.load %arg5[%c0_19, %c0_20, %c0_21] : memref<1x5x128xf32, #tpu.memory_space<vmem>>, vector<1x5x128xf32>
    %34 = vector.shape_cast %33 : vector<1x5x128xf32> to vector<5x128xf32>
    %35 = vector.shape_cast %32 : vector<5x128xf32> to vector<1x5x128xf32>
    tpu.vector_store %arg5[%c0_19, %c0_20, %c0_21], %35 {strides = array<i32>} : memref<1x5x128xf32, #tpu.memory_space<vmem>>, vector<1x5x128xf32>,
    %36 = arith.mulf %32, %20 : vector<5x128xf32>
    %cst_22 = arith.constant dense<0.000000e+00> : vector<128xf32>
    %37 = vector.multi_reduction <add>, %36, %cst_22 [0] : vector<5x128xf32> to vector<128xf32>
    %38 = vector.shape_cast %37 : vector<128xf32> to vector<1x128xf32>
    %c0_23 = arith.constant 0 : index
    %c0_24 = arith.constant 0 : index
    %c0_25 = arith.constant 0 : index
    %39 = vector.load %arg6[%c0_23, %c0_24, %c0_25] : memref<1x1x128xf32, #tpu.memory_space<vmem>>, vector<1x1x128xf32>
    %40 = vector.shape_cast %39 : vector<1x1x128xf32> to vector<1x128xf32>
    %41 = vector.shape_cast %38 : vector<1x128xf32> to vector<1x1x128xf32>
    tpu.vector_store %arg6[%c0_23, %c0_24, %c0_25], %41 {strides = array<i32>} : memref<1x1x128xf32, #tpu.memory_space<vmem>>, vector<1x1x128xf32>,
    return
  }
  func.func @transform_0(%arg0: i32) -> (i32, i32, i32) {
    %c0_i32 = arith.constant 0 : i32
    %c0_i32_0 = arith.constant 0 : i32
    %c0_i32_1 = arith.constant 0 : i32
    return %arg0, %c0_i32, %c0_i32_0 : i32, i32, i32
  }
  func.func @transform_1(%arg0: i32) -> (i32, i32, i32) {
    %c0_i32 = arith.constant 0 : i32
    %c0_i32_0 = arith.constant 0 : i32
    %c0_i32_1 = arith.constant 0 : i32
    %c0_i32_2 = arith.constant 0 : i32
    return %c0_i32, %c0_i32_0, %c0_i32_1 : i32, i32, i32
  }
  func.func @transform_2(%arg0: i32) -> (i32, i32) {
    %c0_i32 = arith.constant 0 : i32
    %c0_i32_0 = arith.constant 0 : i32
    %c0_i32_1 = arith.constant 0 : i32
    return %c0_i32, %c0_i32_0 : i32, i32
  }
  func.func @transform_3(%arg0: i32) -> (i32, i32) {
    %c0_i32 = arith.constant 0 : i32
    %c0_i32_0 = arith.constant 0 : i32
    %c0_i32_1 = arith.constant 0 : i32
    return %c0_i32, %c0_i32_0 : i32, i32
  }
  func.func @transform_4(%arg0: i32) -> (i32, i32, i32) {
    %c0_i32 = arith.constant 0 : i32
    %c0_i32_0 = arith.constant 0 : i32
    %c0_i32_1 = arith.constant 0 : i32
    return %arg0, %c0_i32, %c0_i32_0 : i32, i32, i32
  }
  func.func @transform_5(%arg0: i32) -> (i32, i32, i32) {
    %c0_i32 = arith.constant 0 : i32
    %c0_i32_0 = arith.constant 0 : i32
    %c0_i32_1 = arith.constant 0 : i32
    return %arg0, %c0_i32, %c0_i32_0 : i32, i32, i32
  }
}

</mosaic_0001>

<bundles_post_ra>
// kernel: tpu_custom_call.1
= control target key start
LH: loop header
LB: loop body
LE: loop exit
PB: predicated region body
PF: predicated region fallthrough
CT: control target
= control target key end

     0   :  { %11 = vsyncpa [#allocation3], 0  ;;  %s1868_s0 = inlined_call_operand.vmem [shape: f32[4,130,32], index: 0, kind: input, shape index: {}]   ;;  %s1869_s1 = inlined_call_operand.vmem [shape: f32[3,5,32], index: 1, kind: input, shape index: {}]   ;;  %s1870_s2 = inlined_call_operand.vmem [shape: f32[5,1], index: 2, kind: input, shape index: {}]   ;;  %s1871_s3 = inlined_call_operand.vmem [shape: f32[128,128], index: 3, kind: input, shape index: {}]   ;;  %s1872_s4 = inlined_call_operand.vmem [shape: f32[4,5,128], index: 4, kind: output, shape index: {0}]   ;;  %s1873_s5 = inlined_call_operand.hbm [shape: f32[4,1,128], index: 5, kind: output, shape index: {1}]  }
   0x1   :  { %13 = vsyncpa [#allocation3 + $0x1], 0  ;;  %s1417_s18 = smov 0   ;;  %s1419_s19 = smov 0  }
   0x2   :  { %s1421_s20 = smov 0   ;;  %s1423_s21 = smov 0  }
   0x3 LB: > { %s1438_s22 = sadd.s32 4294967295, %s1380_s21   ;;  %s879_s23 = sadd.s32 4294967294, %s1380_s21   ;;  %s1380_s21 = sphi %s1423_s21, %s1881_s21   ;;  %s1376_s20 = sphi %s1421_s20, %s1880_s20   ;;  %s1372_s19 = sphi %s1419_s19, %s1879_s19   ;;  %s1368_s18 = sphi %s1417_s18, %s1878_s18  }
   0x4   : > { %s1442_s24 = sadd.s32 1, %s1380_s21   ;;  %s141_s25 = sadd.s32 1, %s1376_s20 }
   0x5   : > { %s138_s26 = ssub.s32 %s1380_s21, %s1442_s24  ;;  %p151_p0 = scmp.ne.s32.totalorder %s1376_s20, %s1372_s19 }
   0x6   : > { %p139_p1 = scmp.eq.s32.totalorder %s138_s26, 0  ;;  %p152_p2 = scmp.eq.s32.totalorder %s1438_s22, 3 }
   0x7   : > { %p157_p3 = scmp.ne.s32.totalorder %s1372_s19, %s1368_s18  ;;  %p158_p4 = scmp.eq.s32.totalorder %s879_s23, 3 }
   0x8   : > { %s1453_s27 = scalar_select %p139_p1, %s1376_s20, %s141_s25  }
   0x9   : > { %p1455_p5 = por %p152_p2, %p151_p0  ;;  %p1459_p6 = por %p158_p4, %p157_p3 }
   0xa   : > { %p882_p7 = scmp.ge.s32.totalorder %s1380_s21, 1  ;;  %p193_p8 = scmp.lt.s32.totalorder %s1380_s21, 5 }
   0xc   : > { %p194_p9 = pnand %p882_p7, %p193_p8 }
   0xd   : > { %p224_p10 = scmp.lt.s32.totalorder (!%p194_p9), %s1438_s22, 3  ;;  %v1382_v0 = vmov (!%p194_p9), 0.0|0.0   ;;  %vm1383_vm0 = vmmov (!%p194_p9), 0   ;;  %v1384_v1 = vmov (!%p194_p9), 0.0   ;;  %vm304_vm1 = vcmask (!%p194_p9), 261120   ;;  %v666_v8 = vld [vmem:[%s1871_s3 + $0x10] sm:$0xff] (!%p194_p9) }
   0xe   : > { %197 = sbr.rel (%p194_p9) target bundleno = 670 (0x29e), region = 36  ;;  %1149 = vmatprep.subr.bf16.mxu0 (!%p194_p9), %v1382_v0  ;;  %1181 = vmatprep.subr.bf16.mxu1 (!%p194_p9), %v1382_v0  ;;  %vm270_vm2 = vcmask (!%p194_p9), 1046528   ;;  %vm1486_vm3 = vmpackc.low (!%p194_p9), %vm304_vm1, %vm304_vm1  ;;  %vm517_vm4 = vcmask (!%p194_p9), 1045504   ;;  %vm750_vm5 = vcmask (!%p194_p9), 1044480   ;;  %s938_s10 = sshll.u32 (!%p194_p9), %s1438_s22, 4 }
   0xf   : > { %1041 = vmatprep.mubr.msk.f32.mxu0 (!%p194_p9), %vm1383_vm0, %v1384_v1  ;;  %1076 = vmatprep.mubr.msk.f32.mxu1 (!%p194_p9), %vm1383_vm0, %v1384_v1  ;;  %s1826_s14 = scalar_lea.hbm (!%p194_p9), %s1873_s5, %s938_s10 }
  0x15   : > { %s1469_s30 = scalar_select %p224_p10, %s1438_s22, 3 }
  0x16   : > { %s1386_s22 = smov [#allocation2]  }
  0x17   : > { %s1269_s6 = smul.u32 136, %s1469_s30  ;;  %s884_s26 = sshll.u32 %s1469_s30, 3 }
  0x18   : > { %s232_s8 = scalar_lea.vmem %s1872_s4, %s884_s26  ;;  %s1322_s17 = sshll.u32 %s1386_s22, 4  ;;  %s1323_s17 = int_to_ptr.vmem [resolvable:$false] %s1322_s17 }
  0x19   : > { %s1479_s9 = scalar_lea.vmem %s1868_s0, %s1269_s6  ;;  %s1324_s23 = scalar_lea.vmem %s1323_s17, 32 }
  0x1a   : > { %v233_v2 = vld [vmem:[%s1479_s9] sm:$0xff]  ;;  %v234_v3 = vld [vmem:[%s1479_s9 + $0x8] sm:$0xff]  ;;  %v235_v4 = vld [vmem:[%s1479_s9 + $0x10] sm:$0xff] }
  0x1b   : > { %v271_v5 = vrot.slane %v233_v2, 1  ;;  %v272_v6 = vrot.slane %v234_v3, 1  ;;  %v274_v7 = vrot.slane %v235_v4, 1  ;;  %v236_v9 = vld [vmem:[%s1479_s9 + $0x18] sm:$0xff]  ;;  %v1492_v10 = vld [vmem:[%s1479_s9 + $0x20] sm:$0xff]  ;;  %v1182_v11 = vpack.c.bf16 %v234_v3, %v233_v2  ;;  %v1498_v16 = vld [vmem:[%s1479_s9 + $0x28] sm:$0xff] }
  0x1c   : > { %v276_v14 = vrot.slane %v236_v9, 1  ;;  %v278_v15 = vrot.slane %v1492_v10, 1  ;;  %v1501_v17 = vld [vmem:[%s1479_s9 + $0x30] sm:$0xff]  ;;  %v280_v19 = vrot.slane %v1498_v16, 1  ;;  %v1514_v23 = vld [vmem:[%s1479_s9 + $0x38] sm:$0xff]  ;;  %v1186_v24 = vpack.c.bf16 %v236_v9, %v235_v4  ;;  %v1519_v31 = vld [vmem:[%s1479_s9 + $0x40] sm:$0xff] }
  0x1d   : > { %v273_v12 = vsel %vm270_vm2, %v271_v5, %v272_v6  ;;  %v275_v13 = vsel %vm270_vm2, %v272_v6, %v274_v7  ;;  %1184 = vmatpush3.bf16.xpose.msk.msra.mxu1 %vm1486_vm3, %v1182_v11  ;;  %v282_v20 = vrot.slane %v1501_v17, 1  ;;  %v518_v25 = vrot.slane %v233_v2, 2  ;;  %v1537_v38 = vld [vmem:[%s1479_s9 + $0x80] sm:$0x3]  ;;  %v242_v46 = vld [vmem:[%s1479_s9 + $0x48] sm:$0xff]  ;;  %v1559_v51 = vld [vmem:[%s1479_s9 + $0x50] sm:$0xff] }
  0x1e   : > { %v1150_v18 = vpack.c.bf16 %v275_v13, %v273_v12  ;;  %1185 = vmatprep.subr.bf16.mxu1 %v1382_v0  ;;  %v277_v21 = vsel %vm270_vm2, %v274_v7, %v276_v14  ;;  %v279_v22 = vsel %vm270_vm2, %v276_v14, %v278_v15  ;;  %v519_v26 = vrot.slane %v234_v3, 2  ;;  %v244_v56 = vld [vmem:[%s1479_s9 + $0x58] sm:$0xff]  ;;  %v1571_v57 = vld [vmem:[%s1479_s9 + $0x60] sm:$0xff]  ;;  %v1583_v62 = vld [vmem:[%s1479_s9 + $0x68] sm:$0xff] }
  0x1f   : > { %v521_v27 = vrot.slane %v235_v4, 2  ;;  %v1154_v28 = vpack.c.bf16 %v279_v22, %v277_v21  ;;  %v281_v29 = vsel %vm270_vm2, %v278_v15, %v280_v19  ;;  %v283_v30 = vsel %vm270_vm2, %v280_v19, %v282_v20  ;;  %v1586_v63 = vld [vmem:[%s1479_s9 + $0x70] sm:$0xff]  ;;  %v1589_v2 = vld [vmem:[%s1479_s9 + $0x78] sm:$0xff]  ;;  %v657_v15 = vld [vmem:[%s1870_s2] sm:$0x1f]  ;;  %s222_s9 = sand.u32 1, %s1372_s19  }
  0x20   : > { %1152 = vmatpush3.bf16.xpose.msk.msra.mxu0 %vm1486_vm3, %v1150_v18  ;;  %v284_v32 = vrot.slane %v1514_v23, 1  ;;  %v1158_v33 = vpack.c.bf16 %v283_v30, %v281_v29  ;;  %v1190_v34 = vpack.c.bf16 %v1498_v16, %v1492_v10  ;;  %v286_v35 = vrot.slane %v1519_v31, 1  ;;  %s223_s11 = scalar_lea.vmem [#allocation2], %s222_s9  ;;  %s785_s15 = scalar_lea.sflag [#allocation3], %s222_s9 }
  0x21   : > { %1153 = vmatprep.subr.bf16.mxu0 %v1382_v0  ;;  %v1529_v36 = vsel %vm517_vm4, %v518_v25, %v519_v26  ;;  %v1540_v39 = vsel %vm517_vm4, %v519_v26, %v521_v27  ;;  %v523_v40 = vrot.slane %v236_v9, 2  ;;  %v525_v41 = vrot.slane %v1492_v10, 2  ;;  %s800_s12 = sshll.u32 %s223_s11, 4  ;;  %s1828_s12 = int_to_ptr.vmem [resolvable:$true] %s800_s12 }
  0x22   : > { %v1534_v37 = vsel %vm270_vm2, %v282_v20, %v284_v32  ;;  %v549_v42 = vrot.slane %v1537_v38, 2  ;;  %v1214_v43 = vpack.c.bf16 %v1540_v39, %v1529_v36  ;;  %v527_v44 = vrot.slane %v1498_v16, 2  ;;  %v664_v36 = vld [vmem:[%s1871_s3] sm:$0xff]  ;;  %v665_v39 = vld [vmem:[%s1871_s3 + $0x8] sm:$0xff]  ;;  %s1318_s16 = scalar_lea.vmem %s1828_s12, 16  ;;  %p1325_p0 = scmp.lt.s32.totalorder %s1828_s12, %s1323_s17 }
  0x23   : > { %v529_v45 = vrot.slane %v1501_v17, 2  ;;  %v1551_v47 = vsel %vm517_vm4, %v521_v27, %v523_v40  ;;  %v1554_v48 = vsel %vm517_vm4, %v523_v40, %v525_v41  ;;  %v531_v49 = vrot.slane %v1514_v23, 2  ;;  %p1319_p11 = scmp.ne.s32.totalorder %s1828_s12, %s1318_s16  ;;  %p1326_p1 = scmp.lt.s32.totalorder %s1324_s23, %s1318_s16 }
  0x24   : > { %v533_v50 = vrot.slane %v1519_v31, 2  ;;  %v1218_v52 = vpack.c.bf16 %v1554_v48, %v1551_v47  ;;  %v1564_v53 = vsel %vm517_vm4, %v525_v41, %v527_v44  ;;  %v535_v55 = vrot.slane %v242_v46, 2  ;;  %v667_v47 = vld [vmem:[%s1871_s3 + $0x18] sm:$0xff] }
  0x25   : > { %1188 = vmatpush3.bf16.xpose.msk.msra.mxu1 %vm1486_vm3, %v1186_v24  ;;  %v1567_v54 = vsel %vm517_vm4, %v527_v44, %v529_v45  ;;  %v1576_v59 = vsel %vm517_vm4, %v529_v45, %v531_v49  ;;  %v537_v61 = vrot.slane %v1559_v51, 2  ;;  %v539_v5 = vrot.slane %v244_v56, 2  ;;  %p1320_p12 = pnand %p1319_p11, %p1455_p5  ;;  %p1327_p2 = por %p1326_p1, %p1325_p0 }
  0x26   : > { %1189 = vmatprep.subr.bf16.mxu1 %v1382_v0  ;;  %v1222_v58 = vpack.c.bf16 %v1567_v54, %v1564_v53  ;;  %v1579_v60 = vsel %vm517_vm4, %v531_v49, %v533_v50  ;;  %v1594_v4 = vsel %vm517_vm4, %v533_v50, %v535_v55  ;;  %v541_v6 = vrot.slane %v1571_v57, 2  ;;  %v669_v53 = vld [vmem:[%s1871_s3 + $0x28] sm:$0xff] }
  0x27   : > { %v1226_v3 = vpack.c.bf16 %v1579_v60, %v1576_v59  ;;  %v1600_v7 = vsel %vm517_vm4, %v535_v55, %v537_v61  ;;  %v543_v9 = vrot.slane %v1583_v62, 2  ;;  %v545_v10 = vrot.slane %v1586_v63, 2  ;;  %v671_v59 = vld [vmem:[%s1871_s3 + $0x38] sm:$0xff]  ;;  %p1321_p13 = pneg %p1320_p12 }
  0x28   : > { %1156 = vmatpush3.bf16.xpose.msk.msra.mxu0 %vm1486_vm3, %v1154_v28  ;;  %v547_v11 = vrot.slane %v1589_v2, 2  ;;  %v1230_v12 = vpack.c.bf16 %v1600_v7, %v1594_v4  ;;  %v1609_v13 = vsel %vm517_vm4, %v537_v61, %v539_v5  ;;  %v1612_v14 = vsel %vm517_vm4, %v539_v5, %v541_v6  ;;  %v885_v5 = vld [vmem:[%s1869_s1 + $0x8] sm:$0x1f]  ;;  %v674_v4 = vld [vmem:[%s1871_s3 + $0x50] sm:$0xff] }
  0x29   : > { %1157 = vmatprep.subr.bf16.mxu0 %v1382_v0  ;;  %v1234_v16 = vpack.c.bf16 %v1612_v14, %v1609_v13  ;;  %v1622_v18 = vsel %vm517_vm4, %v541_v6, %v543_v9  ;;  %v1625_v19 = vsel %vm517_vm4, %v543_v9, %v545_v10  ;;  %v287_v21 = vsel %vm270_vm2, %v284_v32, %v286_v35  ;;  %v675_v6 = vld [vmem:[%s1871_s3 + $0x58] sm:$0xff]  ;;  %v676_v9 = vld [vmem:[%s1871_s3 + $0x60] sm:$0xff]  ;;  %p1328_p3 = pnand %p1327_p2, %p1321_p13 }
  0x2a   : > { %v1628_v20 = vsel %vm517_vm4, %v545_v10, %v547_v11  ;;  %v1238_v22 = vpack.c.bf16 %v1625_v19, %v1622_v18  ;;  %v1637_v24 = vsel %vm517_vm4, %v547_v11, %v549_v42  ;;  %v1385_v25 = vmov 0   ;;  %v677_v10 = vld [vmem:[%s1871_s3 + $0x68] sm:$0xff]  ;;  %v679_v13 = vld [vmem:[%s1871_s3 + $0x78] sm:$0xff] }
  0x2b   : > { %1313 = vset.pattern.permute.xlu0 %v1385_v25  ;;  %v1194_v26 = vpack.c.bf16 %v1514_v23, %v1501_v17  ;;  %v1242_v27 = vpack.c.bf16 %v1637_v24, %v1628_v20  ;;  %v1162_v28 = vpack.c.bf16 %v287_v21, %v1534_v37  ;;  %v288_v29 = vrot.slane %v242_v46, 1 }
  0x2c   : > { %660 = vperm.xlu0 %1313, %v657_v15   ;;  %v290_v30 = vrot.slane %v1559_v51, 1  ;;  %v1198_v32 = vpack.c.bf16 %v242_v46, %v1519_v31  ;;  %v294_v37 = vrot.slane %v1571_v57, 1  ;;  %v1202_v31 = vpack.c.bf16 %v244_v56, %v1559_v51 }
  0x2d   : > { %1192 = vmatpush3.bf16.xpose.msk.msra.mxu1 %vm1486_vm3, %v1190_v34  ;;  %v289_v17 = vsel %vm270_vm2, %v286_v35, %v288_v29  ;;  %v292_v34 = vrot.slane %v244_v56, 1  ;;  %v296_v42 = vrot.slane %v1583_v62, 1  ;;  %v298_v44 = vrot.slane %v1586_v63, 1 }
  0x2e   : > { %1193 = vmatprep.subr.bf16.mxu1 %v1382_v0  ;;  %v291_v23 = vsel %vm270_vm2, %v288_v29, %v290_v30  ;;  %v1206_v49 = vpack.c.bf16 %v1583_v62, %v1571_v57  ;;  %v300_v51 = vrot.slane %v1589_v2, 1  ;;  %v302_v55 = vrot.slane %v1537_v38, 1  ;;  %v250_v38 = vld [vmem:[%s1869_s1] sm:$0x1f] }
  0x2f   : > { %v293_v35 = vsel %vm270_vm2, %v290_v30, %v292_v34  ;;  %v295_v40 = vsel %vm270_vm2, %v292_v34, %v294_v37  ;;  %v297_v45 = vsel %vm270_vm2, %v294_v37, %v296_v42  ;;  %v299_v46 = vsel %vm270_vm2, %v296_v42, %v298_v44 }
  0x30   : > { %1160 = vmatpush3.bf16.xpose.msk.msra.mxu0 %vm1486_vm3, %v1158_v33  ;;  %v1166_v33 = vpack.c.bf16 %v291_v23, %v289_v17  ;;  %v1170_v41 = vpack.c.bf16 %v295_v40, %v293_v35  ;;  %v1174_v50 = vpack.c.bf16 %v299_v46, %v297_v45  ;;  %v301_v56 = vsel %vm270_vm2, %v298_v44, %v300_v51 }
  0x31   : > { %1161 = vmatprep.subr.bf16.mxu0 %v1382_v0  ;;  %v303_v61 = vsel %vm270_vm2, %v300_v51, %v302_v55  ;;  %v1210_v57 = vpack.c.bf16 %v1589_v2, %v1586_v63  ;;  %v1249_v48 = vpack.c.bf16 %v667_v47, %v666_v8  ;;  %v672_v63 = vld [vmem:[%s1871_s3 + $0x40] sm:$0xff]  ;;  %v673_v2 = vld [vmem:[%s1871_s3 + $0x48] sm:$0xff]  ;;  %v1261_v7 = vpack.c.bf16 %v675_v6, %v674_v4 }
  0x32   : > { %v1178_v62 = vpack.c.bf16 %v303_v61, %v301_v56  ;;  %v1264_v11 = vpack.c.bf16 %v677_v10, %v676_v9 }
  0x35   : > { %1196 = vmatpush3.bf16.xpose.msk.msra.mxu1 %vm1486_vm3, %v1194_v26 }
  0x36   : > { %1197 = vmatprep.subr.bf16.mxu1 %v1382_v0 }
  0x38   : > { %1164 = vmatpush3.bf16.xpose.msk.msra.mxu0 %vm1486_vm3, %v1162_v28 }
  0x39   : > { %1165 = vmatprep.subr.bf16.mxu0 %v1382_v0 }
  0x3d   : > { %1200 = vmatpush3.bf16.xpose.msk.msra.mxu1 %vm1486_vm3, %v1198_v32 }
  0x3e   : > { %1201 = vmatprep.subr.bf16.mxu1 %v1382_v0 }
  0x40   : > { %1168 = vmatpush3.bf16.xpose.msk.msra.mxu0 %vm1486_vm3, %v1166_v33 }
  0x41   : > { %1169 = vmatprep.subr.bf16.mxu0 %v1382_v0 }
  0x45   : > { %1204 = vmatpush3.bf16.xpose.msk.msra.mxu1 %vm1486_vm3, %v1202_v31 }
  0x46   : > { %1205 = vmatprep.subr.bf16.mxu1 %v1382_v0 }
  0x48   : > { %1172 = vmatpush3.bf16.xpose.msk.msra.mxu0 %vm1486_vm3, %v1170_v41 }
  0x49   : > { %1173 = vmatprep.subr.bf16.mxu0 %v1382_v0 }
  0x4d   : > { %1208 = vmatpush3.bf16.xpose.msk.msra.mxu1 %vm1486_vm3, %v1206_v49 }
  0x4e   : > { %1209 = vmatprep.subr.bf16.mxu1 %v1382_v0 }
  0x50   : > { %1176 = vmatpush3.bf16.xpose.msk.msra.mxu0 %vm1486_vm3, %v1174_v50 }
  0x51   : > { %1177 = vmatprep.subr.bf16.mxu0 %v1382_v0 }
  0x55   : > { %1212 = vmatpush3.bf16.xpose.msk.msra.mxu1 %vm1486_vm3, %v1210_v57 }
  0x56   : > { %1245 = vmatprep.subr.bf16.mxu1 %v1382_v0 }
  0x58   : > { %1180 = vmatpush3.bf16.xpose.msk.msra.mxu0 %vm1486_vm3, %v1178_v62 }
  0x59   : > { %1213 = vmatprep.subr.bf16.mxu0 %v1382_v0 }
  0x5c   : > { %1077 = vmatmul.mubr.msk.f32.vlgmr.msra.gmra.mrb[0].mxu1 %vm304_vm1, %v250_v38 }
  0x5d   : > { %1146 = vmatprep.mubr.msk.f32.mxu1 %vm1383_vm0, %v1384_v1 }
  0x5f   : > { %1042 = vmatmul.mubr.msk.f32.vlgmr.msra.gmra.mrb[0].mxu0 %vm304_vm1, %v885_v5 }
  0x60   : > { %1216 = vmatpush3.bf16.xpose.msk.msra.mxu0 %vm1486_vm3, %v1214_v43  ;;  %1111 = vmatprep.mubr.msk.f32.mxu0 %vm1383_vm0, %v1384_v1  ;;  %v920_v1 = vld [vmem:[%s1869_s1 + $0x10] sm:$0x1f]  ;;  %v1246_v43 = vpack.c.bf16 %v665_v39, %v664_v36 }
  0x61   : > { %1217 = vmatprep.subr.bf16.mxu0 %v1382_v0 }
  0x62   : > { %1247 = vmatpush3.bf16.xpose.msra.mxu1 %v1246_v43 }
  0x63   : > { %1248 = vmatprep.subr.bf16.mxu1 %v1382_v0 }
  0x68   : > { %1220 = vmatpush3.bf16.xpose.msk.msra.mxu0 %vm1486_vm3, %v1218_v52  ;;  %v668_v52 = vld [vmem:[%s1871_s3 + $0x20] sm:$0xff] }
  0x69   : > { %1221 = vmatprep.subr.bf16.mxu0 %v1382_v0  ;;  %v1252_v54 = vpack.c.bf16 %v669_v53, %v668_v52 }
  0x6a   : > { %1250 = vmatpush3.bf16.xpose.msra.mxu1 %v1249_v48 }
  0x6b   : > { %1251 = vmatprep.subr.bf16.mxu1 %v1382_v0 }
  0x70   : > { %1224 = vmatpush3.bf16.xpose.msk.msra.mxu0 %vm1486_vm3, %v1222_v58  ;;  %v670_v58 = vld [vmem:[%s1871_s3 + $0x30] sm:$0xff] }
  0x71   : > { %1225 = vmatprep.subr.bf16.mxu0 %v1382_v0  ;;  %v1255_v60 = vpack.c.bf16 %v671_v59, %v670_v58 }
  0x72   : > { %1253 = vmatpush3.bf16.xpose.msra.mxu1 %v1252_v54 }
  0x73   : > { %1254 = vmatprep.subr.bf16.mxu1 %v1382_v0 }
  0x78   : > { %1228 = vmatpush3.bf16.xpose.msk.msra.mxu0 %vm1486_vm3, %v1226_v3  ;;  %v1258_v3 = vpack.c.bf16 %v673_v2, %v672_v63 }
  0x79   : > { %1229 = vmatprep.subr.bf16.mxu0 %v1382_v0 }
  0x7a   : > { %1256 = vmatpush3.bf16.xpose.msra.mxu1 %v1255_v60 }
  0x7b   : > { %1257 = vmatprep.subr.bf16.mxu1 %v1382_v0 }
  0x80   : > { %1232 = vmatpush3.bf16.xpose.msk.msra.mxu0 %vm1486_vm3, %v1230_v12  ;;  %v678_v12 = vld [vmem:[%s1871_s3 + $0x70] sm:$0xff] }
  0x81   : > { %1233 = vmatprep.subr.bf16.mxu0 %v1382_v0  ;;  %v1267_v14 = vpack.c.bf16 %v679_v13, %v678_v12 }
  0x82   : > { %1259 = vmatpush3.bf16.xpose.msra.mxu1 %v1258_v3 }
  0x83   : > { %1260 = vmatprep.subr.bf16.mxu1 %v1382_v0 }
  0x88   : > { %1236 = vmatpush3.bf16.xpose.msk.msra.mxu0 %vm1486_vm3, %v1234_v16 }
  0x89   : > { %1237 = vmatprep.subr.bf16.mxu0 %v1382_v0 }
  0x8a   : > { %1262 = vmatpush3.bf16.xpose.msra.mxu1 %v1261_v7 }
  0x8b   : > { %1263 = vmatprep.subr.bf16.mxu1 %v1382_v0 }
  0x90   : > { %1240 = vmatpush3.bf16.xpose.msk.msra.mxu0 %vm1486_vm3, %v1238_v22 }
  0x91   : > { %1241 = vmatprep.subr.bf16.mxu0 %v1382_v0 }
  0x92   : > { %1265 = vmatpush3.bf16.xpose.msra.mxu1 %v1264_v11 }
  0x93   : > { %1266 = vmatprep.subr.bf16.mxu1 %v1382_v0 }
  0x98   : > { %1244 = vmatpush3.bf16.xpose.msk.msra.mxu0 %vm1486_vm3, %v1242_v27 }
  0x9a   : > { %1268 = vmatpush3.bf16.xpose.msra.mxu1 %v1267_v14 }
  0x9f   : > { %1112 = vmatmul.mubr.msk.f32.vlgmr.msra.gmra.mrb[2].mxu0 %vm304_vm1, %v920_v1 }
  0xab   : > { %v661_v22 = vpop.permute.xlu0 %660 }
 0x12f   : > { %v511_v15 = vpop.f32.mrb[0].mxu1 }
 0x130   : > { %v1078_v16 = vpop.f32.mrb[1].mxu1 }
 0x132   : > { %v406_v18 = vpop.f32.mrb[0].mxu0 }
 0x133   : > { %v1043_v19 = vpop.f32.mrb[1].mxu0  ;;  %v512_v20 = vadd.f32 %v511_v15, %v406_v18 }
 0x172   : > { %v652_v21 = vpop.f32.mrb[2].mxu0 }
 0x173   : > { %v656_v24 = vadd.f32 %v652_v21, %v512_v20  ;;  %v1113_v25 = vpop.f32.mrb[3].mxu0 }
 0x175   : > { %v663_v0 = vadd.f32 %v661_v22, %v656_v24 }
 0x177   : > { %1147 = vmatmul.mubr.f32.vlgmr.msra.gmra.mrb[2].mxu1 %v663_v0 }
 0x24a   : > { %v746_v26 = vpop.f32.mrb[2].mxu1 }
 0x24b   : > { %v751_v27 = vsel %vm750_vm5, %v746_v26, -inf  ;;  %v1148_v28 = vpop.f32.mrb[3].mxu1 }
 0x24c   : > { %v752_v29 = vrot.slane %v751_v27, 4 }
 0x24e   : > { %v753_v30 = vmax.f32 %v751_v27, %v752_v29 }
 0x250   : > { %v754_v17 = vrot.slane %v753_v30, 2 }
 0x252   : > { %v755_v23 = vmax.f32 %v753_v30, %v754_v17 }
 0x254   : > { %v756_v32 = vrot.slane %v755_v23, 1 }
 0x256   : > { %v757_v33 = vmax.f32 %v755_v23, %v756_v32 }
 0x258   : > { %v758_v34 = vsub.f32 %v746_v26, %v757_v33 }
 0x25a   : > { %v759_v37 = vmul.f32 1.442695, %v758_v34 }
 0x25c   : > { %1314 = vpow2.f32 %v759_v37 }
 0x266   : > { %v1315_v35 = vpop.eup %1314 }
 0x267   : > { %v761_v40 = vsel %vm750_vm5, %v1315_v35, 0.0 }
 0x268   : > { %v762_v31 = vrot.slane %v761_v40, 4 }
 0x26a   : > { %v763_v41 = vadd.f32 %v762_v31, %v761_v40 }
 0x26c   : > { %v764_v42 = vrot.slane %v763_v41, 2 }
 0x26e   : > { %v765_v44 = vadd.f32 %v764_v42, %v763_v41 }
 0x270   : > { %v766_v45 = vrot.slane %v765_v44, 1 }
 0x272   : > { %v767_v46 = vadd.f32 %v766_v45, %v765_v44 }
 0x274   : > { %1316 = vrcp.f32 %v767_v46 }
 0x27e   : > { %v1317_v49 = vpop.eup %1316 }
 0x27f   : > { %v769_v50 = vmul.f32 %v1317_v49, %v1315_v35 }
 0x281   : > { %770 = vst [vmem:[%s232_s8] sm:$0x1f] %v769_v50  ;;  %v771_v51 = vmul.f32 %v769_v50, %v663_v0 }
 0x283   : > { %v772_v55 = vsel %vm750_vm5, %v771_v51, 0.0 }
 0x284   : > { %v773_v56 = vrot.slane %v772_v55, 4 }
 0x286   : > { %v774_v61 = vadd.f32 %v773_v56, %v772_v55 }
 0x288   : > { %v775_v57 = vrot.slane %v774_v61, 2 }
 0x28a   : > { %v776_v62 = vadd.f32 %v775_v57, %v774_v61 }
 0x28c   : > { %v777_v38 = vrot.slane %v776_v62, 1 }
 0x28e   : > { %v778_v5 = vadd.f32 %v777_v38, %v776_v62 }
 0x290   : > { %779 = vst [vmem:[%s223_s11] sm:$0x1] %v778_v5 }
 0x291   : > { %1331 = shalt.err (!%p1328_p3)
}
 0x292   : > { %s1332_s25 = scalar_lea.hbm %s1826_s14, 16  ;;  %s1336_s7 = scalar_lea.hbm %s1873_s5, 64 }
 0x293   : > { %p1333_p4 = scmp.ne.s32.totalorder %s1826_s14, %s1332_s25  ;;  %p1337_p9 = scmp.lt.u32.totalorder %s1826_s14, %s1873_s5 }
 0x294   : > { %p1338_p10 = scmp.lt.u32.totalorder %s1336_s7, %s1332_s25  ;;  %p1340_p12 = scmp.lt.u32.totalorder %s1332_s25, %s1826_s14 }
 0x295   : > { %p1334_p7 = pnand %p1333_p4, %p1455_p5 }
 0x296   : > { %p1339_p11 = por %p1338_p10, %p1337_p9 }
 0x297   : > { %p1335_p8 = pneg %p1334_p7 }
 0x298   : > { %p1341_p13 = por %p1340_p12, %p1339_p11 }
 0x29a   : > { %p1342_p0 = pnand %p1341_p13, %p1335_p8 }
 0x29c   : > { %1345 = shalt.err (!%p1342_p0)
}
 0x29d   : > { %1270 = dma.vmem_to_hbm [thread:$0]  (%p1455_p5), %s1828_s12, 16, %s1826_s14, %s785_s15  }
 0x29e PF: > { %p1276_p1 = scmp.ge.s32.totalorder %s1380_s21, 2  ;;  %s819_s10 = sand.u32 1, %s1368_s18  }
 0x29f   : > { %s820_s11 = scalar_lea.sflag [#allocation3], %s819_s10 }
 0x2a0   : > { %p1273_p2 = pnand %p1276_p1, %p1459_p6 }
 0x2a2   : > { %1363 = dma.done.wait (!%p1273_p2), %s820_s11, 16  }
 0x2a3   : > { %1365 = vsyncadd (!%p1273_p2), %s820_s11, 4294967280  ;;  %p16_p3 = scmp.ge.s32.totalorder %s1442_s24, 6   ;;  %s1878_s18 = smov %s1372_s19 }
 0x2a4   : > { %s1879_s19 = smov %s1376_s20  ;;  %s1880_s20 = smov %s1453_s27 }
 0x2a5   : > { %s1881_s21 = smov %s1442_s24  ;;  %18 = sbr.rel (!%p16_p3) target bundleno = 3 (0x3), region = 85 }
 0x2ac   :  { %824 = vsyncpa [#allocation3], 1 }
 0x2ad   :  { %826 = vsyncpa [#allocation3 + $0x1], 1 }

</bundles_post_ra>
